<compile_context>
chip_gen: v7x
topology: tpu7x:2x2x1
jax: 0.10.0
libtpu: 0.0.40
codegen_flags: <defaults>
</compile_context>

<pallas_src>
import jax
import jax.numpy as jnp
from jax.experimental import pallas as pl
from jax.experimental.pallas import tpu as pltpu

INPUT_SIZE = 784          # MnistTrain(pca=False) -> 28*28 features
HIDDEN = [64, 64, 64]
NUM_CLASSES = 10

F_PAD = 896               # 7 * 128 : lane-dense K for the first matmul
H_PAD = 128               # hidden width padded to a full lane group
O_PAD = 128               # lane-dense output block (sliced back to 10 outside)
DEFAULT_TB = 512          # batch rows per grid step


def _round_up(x, m):
    return ((x + m - 1) // m) * m


def mlp_kernel(x_ref, w1_ref, b1_ref, wf_ref, bf_ref, o_ref):
    # hidden1 + ReLU (the only activation that survives the name collision)
    h = jnp.dot(x_ref[...], w1_ref[...], preferred_element_type=jnp.float32)
    h = jnp.maximum(h + b1_ref[...], 0.0)
    # hidden2 @ hidden3 @ classifier, pre-fused in the wrapper into a single matmul
    out = jnp.dot(h.astype(wf_ref.dtype), wf_ref[...],
                  preferred_element_type=jnp.float32)
    o_ref[...] = (out + bf_ref[...]).astype(o_ref.dtype)


def mlp_forward(x, params, *, tb=DEFAULT_TB, use_bf16=False):
    """x: (B, INPUT_SIZE) float32. params: dict from init_params (weights stored
    transposed as (in_features, out_features))."""
    B, F = x.shape
    assert F == INPUT_SIZE

    # ---- fuse the three trailing linear layers (no nonlinearity between them) ----
    w_fused = params["w2"] @ params["w3"] @ params["wc"]                       # (64, 10)
    b_fused = (params["b2"] @ params["w3"] + params["b3"]) @ params["wc"] \
              + params["bc"]                                                   # (1, 10)

    # ---- pad everything to lane-dense shapes (zero padding preserves the math) ----
    w1 = jnp.zeros((F_PAD, H_PAD), jnp.float32).at[:INPUT_SIZE, :HIDDEN[0]].set(params["w1"])
    b1 = jnp.zeros((1, H_PAD), jnp.float32).at[:, :HIDDEN[0]].set(params["b1"])
    wf = jnp.zeros((H_PAD, O_PAD), jnp.float32).at[:HIDDEN[0], :NUM_CLASSES].set(w_fused)
    bf = jnp.zeros((1, O_PAD), jnp.float32).at[:, :NUM_CLASSES].set(b_fused)

    # batch tile: multiple of 8, no larger than the (8-rounded) batch itself
    tb = min(_round_up(tb, 8), _round_up(B, 8))
    Bp = _round_up(B, tb)

    xp = jnp.zeros((Bp, F_PAD), jnp.float32).at[:B, :INPUT_SIZE].set(x)

    compute_dtype = jnp.bfloat16 if use_bf16 else jnp.float32
    xp = xp.astype(compute_dtype)
    w1 = w1.astype(compute_dtype)
    wf = wf.astype(compute_dtype)
    # biases stay f32 (added to the f32 accumulator)

    def resident(arr):
        # weights/biases: whole array VMEM-resident, same block every grid step
        return pl.BlockSpec(arr.shape, lambda i: (0,) * arr.ndim)

    itemsize = jnp.dtype(compute_dtype).itemsize
    cost = pl.CostEstimate(
        flops=2 * Bp * (F_PAD * H_PAD + H_PAD * O_PAD),
        transcendentals=0,
        bytes_accessed=Bp * F_PAD * itemsize
        + (F_PAD * H_PAD + H_PAD * O_PAD) * itemsize
        + Bp * O_PAD * 4,
    )

    out_padded = pl.pallas_call(
        mlp_kernel,
        out_shape=jax.ShapeDtypeStruct((Bp, O_PAD), jnp.float32),
        grid_spec=pltpu.PrefetchScalarGridSpec(
            num_scalar_prefetch=0,
            grid=(Bp // tb,),
            in_specs=[
                pl.BlockSpec((tb, F_PAD), lambda i: (i, 0)),   # streamed x tile
                resident(w1), resident(b1),
                resident(wf), resident(bf),
            ],
            out_specs=pl.BlockSpec((tb, O_PAD), lambda i: (i, 0)),
        ),
        compiler_params=pltpu.CompilerParams(
            dimension_semantics=("parallel",),
        ),
        cost_estimate=cost,
    )(xp, w1, b1, wf, bf)

    return out_padded[:B, :NUM_CLASSES]


def init_params(key):
    """Deterministic init mimicking torch.nn.Linear default U(-1/sqrt(fan_in), +).
    Weights are stored transposed: (in_features, out_features)."""
    params = {}
    dims = [INPUT_SIZE] + HIDDEN + [NUM_CLASSES]
    names = ["1", "2", "3", "c"]
    for name, fan_in, fan_out in zip(names, dims[:-1], dims[1:]):
        key, kw, kb = jax.random.split(key, 3)
        bound = 1.0 / jnp.sqrt(fan_in)
        params[f"w{name}"] = jax.random.uniform(
            kw, (fan_in, fan_out), jnp.float32, -bound, bound)
        params[f"b{name}"] = jax.random.uniform(
            kb, (1, fan_out), jnp.float32, -bound, bound)
    return params


def mlp_reference(x, params):
    # unfused fp32 reference with the exact PyTorch semantics (single ReLU)
    h = jnp.maximum(x @ params["w1"] + params["b1"], 0.0)
    h = h @ params["w2"] + params["b2"]
    h = h @ params["w3"] + params["b3"]
    return h @ params["wc"] + params["bc"]


if __name__ == "__main__":
    key = jax.random.PRNGKey(0)
    key, kx = jax.random.split(key)
    B = 32                                   # small, ragged-friendly test batch
    x = jax.random.normal(kx, (B, INPUT_SIZE), jnp.float32)
    params = init_params(key)

    ref = mlp_reference(x, params)

    # fp32 path (tight tolerance)
    out = jax.block_until_ready(mlp_forward(x, params, use_bf16=False))
    assert out.shape == (B, NUM_CLASSES)
    assert jnp.allclose(out, ref, atol=1e-4, rtol=1e-4)

    # bf16-input MXU path (f32 accumulation; looser tolerance)
    out_bf16 = jax.block_until_ready(mlp_forward(x, params, use_bf16=True))
    assert out_bf16.shape == (B, NUM_CLASSES)
    assert jnp.allclose(out_bf16, ref, atol=5e-2, rtol=5e-2)

    print("KERNEL_OK")
</pallas_src>

<mosaic_0001>
module attributes {stable_mosaic.version = 11 : i64} {
  func.func @mlp_kernel(%arg0: i32, %arg1: memref<32x896xf32, #tpu.memory_space<vmem>>, %arg2: memref<896x128xf32, #tpu.memory_space<vmem>>, %arg3: memref<1x128xf32, #tpu.memory_space<vmem>>, %arg4: memref<128x128xf32, #tpu.memory_space<vmem>>, %arg5: memref<1x128xf32, #tpu.memory_space<vmem>>, %arg6: memref<32x128xf32, #tpu.memory_space<vmem>>) attributes {dimension_semantics = [#tpu.dimension_semantics<parallel>], iteration_bounds = array<i64: 1>, scalar_prefetch = 0 : i64, scratch_operands = 0 : i64, tpu.core_type = #tpu.core_type<tc>, window_params = [{transform_indices = @transform_0, window_bounds = array<i64: 32, 896>}, {pipeline_mode = #tpu.pipeline_mode<synchronous>, transform_indices = @transform_1, window_bounds = array<i64: 896, 128>}, {pipeline_mode = #tpu.pipeline_mode<synchronous>, transform_indices = @transform_2, window_bounds = array<i64: 1, 128>}, {pipeline_mode = #tpu.pipeline_mode<synchronous>, transform_indices = @transform_3, window_bounds = array<i64: 128, 128>}, {pipeline_mode = #tpu.pipeline_mode<synchronous>, transform_indices = @transform_4, window_bounds = array<i64: 1, 128>}, {transform_indices = @transform_5, window_bounds = array<i64: 32, 128>}]} {
    %c0 = arith.constant 0 : index
    %c0_0 = arith.constant 0 : index
    %0 = vector.load %arg1[%c0, %c0_0] : memref<32x896xf32, #tpu.memory_space<vmem>>, vector<32x896xf32>
    %c0_1 = arith.constant 0 : index
    %c0_2 = arith.constant 0 : index
    %1 = vector.load %arg2[%c0_1, %c0_2] : memref<896x128xf32, #tpu.memory_space<vmem>>, vector<896x128xf32>
    %cst = arith.constant dense<0.000000e+00> : vector<32x128xf32>
    %2 = tpu.matmul %0, %1, %cst {dimension_numbers = #tpu.dot_dimension_numbers<[1], [0], [0], [1], [0, 0, 1, 1], [], []>} : vector<32x896xf32>, vector<896x128xf32>, vector<32x128xf32> -> vector<32x128xf32>
    %c0_3 = arith.constant 0 : index
    %c0_4 = arith.constant 0 : index
    %3 = vector.load %arg3[%c0_3, %c0_4] : memref<1x128xf32, #tpu.memory_space<vmem>>, vector<1x128xf32>
    %4 = vector.broadcast %3 : vector<1x128xf32> to vector<32x128xf32>
    %5 = arith.addf %2, %4 : vector<32x128xf32>
    %cst_5 = arith.constant 0.000000e+00 : f32
    %6 = vector.broadcast %cst_5 : f32 to vector<32x128xf32>
    %7 = arith.maximumf %5, %6 : vector<32x128xf32>
    %c0_6 = arith.constant 0 : index
    %c0_7 = arith.constant 0 : index
    %8 = vector.load %arg4[%c0_6, %c0_7] : memref<128x128xf32, #tpu.memory_space<vmem>>, vector<128x128xf32>
    %cst_8 = arith.constant dense<0.000000e+00> : vector<32x128xf32>
    %9 = tpu.matmul %7, %8, %cst_8 {dimension_numbers = #tpu.dot_dimension_numbers<[1], [0], [0], [1], [0, 0, 1, 1], [], []>} : vector<32x128xf32>, vector<128x128xf32>, vector<32x128xf32> -> vector<32x128xf32>
    %c0_9 = arith.constant 0 : index
    %c0_10 = arith.constant 0 : index
    %10 = vector.load %arg5[%c0_9, %c0_10] : memref<1x128xf32, #tpu.memory_space<vmem>>, vector<1x128xf32>
    %11 = vector.broadcast %10 : vector<1x128xf32> to vector<32x128xf32>
    %12 = arith.addf %9, %11 : vector<32x128xf32>
    %c0_11 = arith.constant 0 : index
    %c0_12 = arith.constant 0 : index
    %13 = vector.load %arg6[%c0_11, %c0_12] : memref<32x128xf32, #tpu.memory_space<vmem>>, vector<32x128xf32>
    tpu.vector_store %arg6[%c0_11, %c0_12], %12 {strides = array<i32>} : memref<32x128xf32, #tpu.memory_space<vmem>>, vector<32x128xf32>,
    return
  }
  func.func @transform_0(%arg0: i32) -> (i32, i32) {
    %c0_i32 = arith.constant 0 : i32
    %c0_i32_0 = arith.constant 0 : i32
    return %arg0, %c0_i32 : i32, i32
  }
  func.func @transform_1(%arg0: i32) -> (i32, i32) {
    %c0_i32 = arith.constant 0 : i32
    %c0_i32_0 = arith.constant 0 : i32
    %c0_i32_1 = arith.constant 0 : i32
    return %c0_i32, %c0_i32_0 : i32, i32
  }
  func.func @transform_2(%arg0: i32) -> (i32, i32) {
    %c0_i32 = arith.constant 0 : i32
    %c0_i32_0 = arith.constant 0 : i32
    %c0_i32_1 = arith.constant 0 : i32
    return %c0_i32, %c0_i32_0 : i32, i32
  }
  func.func @transform_3(%arg0: i32) -> (i32, i32) {
    %c0_i32 = arith.constant 0 : i32
    %c0_i32_0 = arith.constant 0 : i32
    %c0_i32_1 = arith.constant 0 : i32
    return %c0_i32, %c0_i32_0 : i32, i32
  }
  func.func @transform_4(%arg0: i32) -> (i32, i32) {
    %c0_i32 = arith.constant 0 : i32
    %c0_i32_0 = arith.constant 0 : i32
    %c0_i32_1 = arith.constant 0 : i32
    return %c0_i32, %c0_i32_0 : i32, i32
  }
  func.func @transform_5(%arg0: i32) -> (i32, i32) {
    %c0_i32 = arith.constant 0 : i32
    %c0_i32_0 = arith.constant 0 : i32
    return %arg0, %c0_i32 : i32, i32
  }
}

</mosaic_0001>

<bundles_post_ra>
// kernel: tpu_custom_call.1
= control target key start
LH: loop header
LB: loop body
LE: loop exit
PB: predicated region body
PF: predicated region fallthrough
CT: control target
= control target key end

     0   :  { %10 = vsyncpa [#allocation3], 0  ;;  %s1312_s0 = inlined_call_operand.hbm [shape: f32[32,896], index: 0, kind: input, shape index: {}]   ;;  %s1313_s1 = inlined_call_operand.hbm [shape: f32[896,128], index: 1, kind: input, shape index: {}]   ;;  %s1314_s2 = inlined_call_operand.vmem [shape: f32[1,128], index: 2, kind: input, shape index: {}]   ;;  %s1315_s3 = inlined_call_operand.hbm [shape: f32[128,128], index: 3, kind: input, shape index: {}]   ;;  %s1316_s4 = inlined_call_operand.vmem [shape: f32[1,128], index: 4, kind: input, shape index: {}]   ;;  %s1317_s5 = inlined_call_operand.hbm [shape: f32[32,128], index: 5, kind: output, shape index: {}]  }
   0x1   :  { %11 = vsyncpa [#allocation6], 0 }
   0x2   :  { %12 = vsyncpa [#allocation4], 0  ;;  %s1211_s18 = smov [#allocation5]   ;;  %s1117_s22 = scalar_lea.hbm %s1313_s1, 14336 }
   0x3   :  { %s30_s19 = sshll.u32 %s1211_s18, 4  ;;  %p1118_p0 = scmp.ne.s32.totalorder %s1313_s1, %s1117_s22  ;;  %s31_s19 = int_to_ptr.vmem [resolvable:$true] %s30_s19 }
   0x4   :  { %p1121_p1 = scmp.lt.u32.totalorder %s1117_s22, %s1313_s1 }
   0x6   :  { %p1123_p2 = pnand %p1121_p1, %p1118_p0 }
   0x8   :  { %1126 = shalt.err (!%p1123_p2)
}
   0x9   :  { %s1127_s27 = scalar_lea.vmem %s31_s19, 14336  ;;  %p1132_p4 = scmp.lt.s32.totalorder %s31_s19, %s31_s19 }
   0xa   :  { %p1128_p3 = scmp.ne.s32.totalorder %s31_s19, %s1127_s27  ;;  %p1133_p5 = scmp.lt.s32.totalorder %s1127_s27, %s1127_s27 }
   0xc   :  { %p1134_p6 = por %p1133_p5, %p1132_p4 }
   0xe   :  { %p1135_p7 = pnand %p1134_p6, %p1128_p3 }
  0x10   :  { %1138 = shalt.err (!%p1135_p7)
}
  0x11   :  { %s1212_s28 = smov 128   ;;  %s1213_s29 = smov 8  }
  0x12   :  { %36 = dma.hbm_to_vmem [thread:$0]  %s1313_s1, 14336, %s31_s19, [#allocation6], %s1212_s28, %s1212_s28, %s1213_s29  }
  0x13   :  { %s1214_s7 = smov [#allocation2]   ;;  %s1139_s11 = scalar_lea.hbm %s1312_s0, 3584 }
  0x14   :  { %s18_s8 = sshll.u32 %s1214_s7, 4  ;;  %p1140_p8 = scmp.ne.s32.totalorder %s1312_s0, %s1139_s11  ;;  %s19_s8 = int_to_ptr.vmem [resolvable:$true] %s18_s8 }
  0x15   :  { %p1143_p9 = scmp.lt.u32.totalorder %s1139_s11, %s1312_s0 }
  0x17   :  { %p1145_p10 = pnand %p1143_p9, %p1140_p8 }
  0x19   :  { %1148 = shalt.err (!%p1145_p10)
}
  0x1a   :  { %s1149_s16 = scalar_lea.vmem %s19_s8, 3584  ;;  %p1154_p12 = scmp.lt.s32.totalorder %s19_s8, %s19_s8 }
  0x1b   :  { %p1150_p11 = scmp.ne.s32.totalorder %s19_s8, %s1149_s16  ;;  %p1155_p13 = scmp.lt.s32.totalorder %s1149_s16, %s1149_s16 }
  0x1d   :  { %p1156_p0 = por %p1155_p13, %p1154_p12 }
  0x1f   :  { %p1157_p1 = pnand %p1156_p0, %p1150_p11 }
  0x21   :  { %1160 = shalt.err (!%p1157_p1)
}
  0x22   :  { %s1215_s1 = smov 896   ;;  %s1216_s17 = smov 56  }
  0x23   :  { %24 = dma.hbm_to_vmem [thread:$0]  %s1312_s0, 3584, %s19_s8, [#allocation3], %s1215_s1, %s1215_s1, %s1216_s17  }
  0x24   :  { %s1217_s20 = smov [#allocation7]   ;;  %s1161_s24 = scalar_lea.hbm %s1315_s3, 2048 }
  0x25   :  { %s44_s21 = sshll.u32 %s1217_s20, 4  ;;  %p1162_p2 = scmp.ne.s32.totalorder %s1315_s3, %s1161_s24  ;;  %s45_s21 = int_to_ptr.vmem [resolvable:$true] %s44_s21 }
  0x26   :  { %p1165_p3 = scmp.lt.u32.totalorder %s1161_s24, %s1315_s3 }
  0x28   :  { %p1167_p4 = pnand %p1165_p3, %p1162_p2 }
  0x2a   :  { %1170 = shalt.err (!%p1167_p4)
}
  0x2b   :  { %s1171_s6 = scalar_lea.vmem %s45_s21, 2048  ;;  %p1176_p6 = scmp.lt.s32.totalorder %s45_s21, %s45_s21 }
  0x2c   :  { %p1172_p5 = scmp.ne.s32.totalorder %s45_s21, %s1171_s6  ;;  %p1177_p7 = scmp.lt.s32.totalorder %s1171_s6, %s1171_s6 }
  0x2e   :  { %p1178_p8 = por %p1177_p7, %p1176_p6 }
  0x30   :  { %p1179_p9 = pnand %p1178_p8, %p1172_p5 }
  0x32   :  { %1182 = shalt.err (!%p1179_p9)
}
  0x33   :  { %50 = dma.hbm_to_vmem [thread:$0]  %s1315_s3, 2048, %s45_s21, [#allocation6], %s1212_s28, %s1212_s28, %s1213_s29  }
  0x34   :  { %1205 = dma.done.wait [#allocation3], 3584  }
  0x35   :  { %1206 = vsyncadd [#allocation3], 4294963712 }
  0x36   :  { %1207 = dma.done.wait [#allocation6], 16384  }
  0x37   :  { %1208 = vsyncadd [#allocation6], 4294950912  ;;  %v106_v0 = vld [vmem:[#allocation5 + $0x80] sm:$0xff]  ;;  %v107_v1 = vld [vmem:[#allocation5 + $0x88] sm:$0xff]  ;;  %s1218_s10 = smov [#allocation8]  }
  0x38   :  { %v90_v2 = vld [vmem:[#allocation5] sm:$0xff]  ;;  %v933_v3 = vpack.c.bf16 %v107_v1, %v106_v0  ;;  %v91_v4 = vld [vmem:[#allocation5 + $0x8] sm:$0xff]  ;;  %v108_v11 = vld [vmem:[#allocation5 + $0x90] sm:$0xff]  ;;  %s670_s11 = sshll.u32 %s1218_s10, 4  ;;  %s671_s11 = int_to_ptr.vmem [resolvable:$true] %s670_s11 }
  0x39   :  { %v138_v5 = vld [vmem:[#allocation5 + $0x180] sm:$0xff]  ;;  %v139_v6 = vld [vmem:[#allocation5 + $0x188] sm:$0xff]  ;;  %v935_v7 = vpack.c.bf16 %v91_v4, %v90_v2  ;;  %v109_v13 = vld [vmem:[#allocation5 + $0x98] sm:$0xff]  ;;  %s1183_s12 = scalar_lea.vmem %s671_s11, 512  ;;  %p1188_p11 = scmp.lt.s32.totalorder %s671_s11, %s671_s11 }
  0x3a   :  { %v965_v8 = vpack.c.bf16 %v139_v6, %v138_v5  ;;  %v122_v9 = vld [vmem:[#allocation5 + $0x100] sm:$0xff]  ;;  %v123_v10 = vld [vmem:[#allocation5 + $0x108] sm:$0xff]  ;;  %934 = vmatprep.subr.bf16.mxu0 %v933_v3  ;;  %v92_v14 = vld [vmem:[#allocation5 + $0x10] sm:$0xff]  ;;  %v937_v16 = vpack.c.bf16 %v109_v13, %v108_v11  ;;  %p1184_p10 = scmp.ne.s32.totalorder %s671_s11, %s1183_s12  ;;  %p1189_p12 = scmp.lt.s32.totalorder %s1183_s12, %s1183_s12 }
  0x3b   :  { %v967_v12 = vpack.c.bf16 %v123_v10, %v122_v9  ;;  %v93_v15 = vld [vmem:[#allocation5 + $0x18] sm:$0xff]  ;;  %936 = vmatpush3.bf16.msra.mxu0 %v935_v7  ;;  %v140_v18 = vld [vmem:[#allocation5 + $0x190] sm:$0xff]  ;;  %v110_v23 = vld [vmem:[#allocation5 + $0xa0] sm:$0xff] }
  0x3c   :  { %966 = vmatprep.subr.bf16.mxu1 %v965_v8  ;;  %v939_v17 = vpack.c.bf16 %v93_v15, %v92_v14  ;;  %v141_v19 = vld [vmem:[#allocation5 + $0x198] sm:$0xff]  ;;  %v124_v20 = vld [vmem:[#allocation5 + $0x110] sm:$0xff]  ;;  %v111_v24 = vld [vmem:[#allocation5 + $0xa8] sm:$0xff]  ;;  %938 = vmatprep.subr.bf16.mxu0 %v937_v16  ;;  %p1190_p13 = por %p1189_p12, %p1188_p11 }
  0x3d   :  { %968 = vmatpush3.bf16.msra.mxu1 %v967_v12  ;;  %v969_v21 = vpack.c.bf16 %v141_v19, %v140_v18  ;;  %v125_v22 = vld [vmem:[#allocation5 + $0x118] sm:$0xff]  ;;  %v941_v26 = vpack.c.bf16 %v111_v24, %v110_v23  ;;  %v94_v27 = vld [vmem:[#allocation5 + $0x20] sm:$0xff]  ;;  %v95_v28 = vld [vmem:[#allocation5 + $0x28] sm:$0xff] }
  0x3e   :  { %v971_v25 = vpack.c.bf16 %v125_v22, %v124_v20  ;;  %v142_v29 = vld [vmem:[#allocation5 + $0x1a0] sm:$0xff]  ;;  %v143_v30 = vld [vmem:[#allocation5 + $0x1a8] sm:$0xff]  ;;  %v943_v33 = vpack.c.bf16 %v95_v28, %v94_v27  ;;  %v112_v35 = vld [vmem:[#allocation5 + $0xb0] sm:$0xff]  ;;  %p1191_p0 = pnand %p1190_p13, %p1184_p10 }
  0x3f   :  { %970 = vmatprep.subr.bf16.mxu1 %v969_v21  ;;  %v126_v31 = vld [vmem:[#allocation5 + $0x120] sm:$0xff]  ;;  %v127_v32 = vld [vmem:[#allocation5 + $0x128] sm:$0xff]  ;;  %940 = vmatpush3.bf16.msra.mxu0 %v939_v17  ;;  %v973_v34 = vpack.c.bf16 %v143_v30, %v142_v29  ;;  %v113_v36 = vld [vmem:[#allocation5 + $0xb8] sm:$0xff] }
  0x40   :  { %v96_v37 = vld [vmem:[#allocation5 + $0x30] sm:$0xff]  ;;  %942 = vmatprep.subr.bf16.mxu0 %v941_v26  ;;  %v975_v38 = vpack.c.bf16 %v127_v32, %v126_v31  ;;  %v945_v39 = vpack.c.bf16 %v113_v36, %v112_v35  ;;  %v97_v40 = vld [vmem:[#allocation5 + $0x38] sm:$0xff]  ;;  %v114_v46 = vld [vmem:[#allocation5 + $0xc0] sm:$0xff] }
  0x41   :  { %972 = vmatpush3.bf16.msra.mxu1 %v971_v25  ;;  %v144_v41 = vld [vmem:[#allocation5 + $0x1b0] sm:$0xff]  ;;  %v145_v42 = vld [vmem:[#allocation5 + $0x1b8] sm:$0xff]  ;;  %v115_v47 = vld [vmem:[#allocation5 + $0xc8] sm:$0xff]  ;;  %v947_v48 = vpack.c.bf16 %v97_v40, %v96_v37 }
  0x42   :  { %974 = vmatprep.subr.bf16.mxu1 %v973_v34  ;;  %v977_v43 = vpack.c.bf16 %v145_v42, %v144_v41  ;;  %v128_v44 = vld [vmem:[#allocation5 + $0x130] sm:$0xff]  ;;  %v129_v45 = vld [vmem:[#allocation5 + $0x138] sm:$0xff]  ;;  %v146_v49 = vld [vmem:[#allocation5 + $0x1c0] sm:$0xff]  ;;  %v949_v52 = vpack.c.bf16 %v115_v47, %v114_v46 }
  0x43   :  { %944 = vmatpush3.bf16.msra.mxu0 %v943_v33  ;;  %v147_v50 = vld [vmem:[#allocation5 + $0x1c8] sm:$0xff]  ;;  %v979_v51 = vpack.c.bf16 %v129_v45, %v128_v44  ;;  %v98_v53 = vld [vmem:[#allocation5 + $0x40] sm:$0xff]  ;;  %v116_v58 = vld [vmem:[#allocation5 + $0xd0] sm:$0xff] }
  0x44   :  { %946 = vmatprep.subr.bf16.mxu0 %v945_v39  ;;  %v99_v54 = vld [vmem:[#allocation5 + $0x48] sm:$0xff]  ;;  %v130_v55 = vld [vmem:[#allocation5 + $0x140] sm:$0xff]  ;;  %v981_v56 = vpack.c.bf16 %v147_v50, %v146_v49  ;;  %v117_v59 = vld [vmem:[#allocation5 + $0xd8] sm:$0xff] }
  0x45   :  { %976 = vmatpush3.bf16.msra.mxu1 %v975_v38  ;;  %v131_v57 = vld [vmem:[#allocation5 + $0x148] sm:$0xff]  ;;  %v148_v60 = vld [vmem:[#allocation5 + $0x1d0] sm:$0xff]  ;;  %v149_v61 = vld [vmem:[#allocation5 + $0x1d8] sm:$0xff]  ;;  %v951_v62 = vpack.c.bf16 %v99_v54, %v98_v53  ;;  %v953_v0 = vpack.c.bf16 %v117_v59, %v116_v58 }
  0x46   :  { %978 = vmatprep.subr.bf16.mxu1 %v977_v43  ;;  %v983_v63 = vpack.c.bf16 %v131_v57, %v130_v55  ;;  %v100_v1 = vld [vmem:[#allocation5 + $0x50] sm:$0xff]  ;;  %v101_v2 = vld [vmem:[#allocation5 + $0x58] sm:$0xff]  ;;  %v985_v4 = vpack.c.bf16 %v149_v61, %v148_v60  ;;  %v118_v6 = vld [vmem:[#allocation5 + $0xe0] sm:$0xff] }
  0x47   :  { %948 = vmatpush3.bf16.msra.mxu0 %v947_v48  ;;  %v132_v3 = vld [vmem:[#allocation5 + $0x150] sm:$0xff]  ;;  %v133_v5 = vld [vmem:[#allocation5 + $0x158] sm:$0xff]  ;;  %v119_v7 = vld [vmem:[#allocation5 + $0xe8] sm:$0xff]  ;;  %v955_v10 = vpack.c.bf16 %v101_v2, %v100_v1 }
  0x48   :  { %950 = vmatprep.subr.bf16.mxu0 %v949_v52  ;;  %v150_v8 = vld [vmem:[#allocation5 + $0x1e0] sm:$0xff]  ;;  %v151_v9 = vld [vmem:[#allocation5 + $0x1e8] sm:$0xff]  ;;  %v987_v13 = vpack.c.bf16 %v133_v5, %v132_v3  ;;  %v957_v14 = vpack.c.bf16 %v119_v7, %v118_v6  ;;  %v120_v19 = vld [vmem:[#allocation5 + $0xf0] sm:$0xff] }
  0x49   :  { %980 = vmatpush3.bf16.msra.mxu1 %v979_v51  ;;  %v102_v11 = vld [vmem:[#allocation5 + $0x60] sm:$0xff]  ;;  %v63_v12 = vld [vmem:[#allocation2 + $0x8] sm:$0xff]  ;;  %v989_v18 = vpack.c.bf16 %v151_v9, %v150_v8  ;;  %v121_v20 = vld [vmem:[#allocation5 + $0xf8] sm:$0xff] }
  0x4a   :  { %982 = vmatprep.subr.bf16.mxu1 %v981_v56  ;;  %v103_v15 = vld [vmem:[#allocation5 + $0x68] sm:$0xff]  ;;  %v134_v16 = vld [vmem:[#allocation5 + $0x160] sm:$0xff]  ;;  %273 = vmatprep.mubr.f32.mxu0 %v63_v12  ;;  %v65_v21 = vld [vmem:[#allocation2 + $0x18] sm:$0xff]  ;;  %v961_v26 = vpack.c.bf16 %v121_v20, %v120_v19 }
  0x4b   :  { %952 = vmatpush3.bf16.msra.mxu0 %v951_v62  ;;  %v135_v17 = vld [vmem:[#allocation5 + $0x168] sm:$0xff]  ;;  %v152_v22 = vld [vmem:[#allocation5 + $0x1f0] sm:$0xff]  ;;  %v153_v23 = vld [vmem:[#allocation5 + $0x1f8] sm:$0xff]  ;;  %358 = vmatprep.mubr.f32.mxu1 %v65_v21  ;;  %v959_v24 = vpack.c.bf16 %v103_v15, %v102_v11 }
  0x4c   :  { %954 = vmatprep.subr.bf16.mxu0 %v953_v0  ;;  %v991_v25 = vpack.c.bf16 %v135_v17, %v134_v16  ;;  %v104_v27 = vld [vmem:[#allocation5 + $0x70] sm:$0xff]  ;;  %v105_v28 = vld [vmem:[#allocation5 + $0x78] sm:$0xff]  ;;  %v993_v30 = vpack.c.bf16 %v153_v23, %v152_v22  ;;  %v170_v32 = vld [vmem:[#allocation5 + $0x280] sm:$0xff] }
  0x4d   :  { %984 = vmatpush3.bf16.msra.mxu1 %v983_v63  ;;  %v136_v29 = vld [vmem:[#allocation5 + $0x170] sm:$0xff]  ;;  %v137_v31 = vld [vmem:[#allocation5 + $0x178] sm:$0xff]  ;;  %v171_v33 = vld [vmem:[#allocation5 + $0x288] sm:$0xff]  ;;  %v963_v36 = vpack.c.bf16 %v105_v28, %v104_v27 }
  0x4e   :  { %986 = vmatprep.subr.bf16.mxu1 %v985_v4  ;;  %v186_v34 = vld [vmem:[#allocation5 + $0x300] sm:$0xff]  ;;  %v187_v35 = vld [vmem:[#allocation5 + $0x308] sm:$0xff]  ;;  %v995_v37 = vpack.c.bf16 %v137_v31, %v136_v29  ;;  %v997_v38 = vpack.c.bf16 %v171_v33, %v170_v32  ;;  %v172_v41 = vld [vmem:[#allocation5 + $0x290] sm:$0xff] }
  0x4f   :  { %956 = vmatpush3.bf16.msra.mxu0 %v955_v10  ;;  %v154_v39 = vld [vmem:[#allocation5 + $0x200] sm:$0xff]  ;;  %v155_v40 = vld [vmem:[#allocation5 + $0x208] sm:$0xff]  ;;  %v173_v42 = vld [vmem:[#allocation5 + $0x298] sm:$0xff]  ;;  %v1029_v43 = vpack.c.bf16 %v187_v35, %v186_v34 }
  0x50   :  { %958 = vmatprep.subr.bf16.mxu0 %v957_v14  ;;  %v188_v44 = vld [vmem:[#allocation5 + $0x310] sm:$0xff]  ;;  %v189_v45 = vld [vmem:[#allocation5 + $0x318] sm:$0xff]  ;;  %v62_v46 = vld [vmem:[#allocation2] sm:$0xff]  ;;  %v999_v47 = vpack.c.bf16 %v155_v40, %v154_v39  ;;  %v1001_v49 = vpack.c.bf16 %v173_v42, %v172_v41 }
  0x51   :  { %988 = vmatpush3.bf16.msra.mxu1 %v987_v13  ;;  %v64_v48 = vld [vmem:[#allocation2 + $0x10] sm:$0xff]  ;;  %v157_v51 = vld [vmem:[#allocation5 + $0x218] sm:$0xff]  ;;  %v174_v52 = vld [vmem:[#allocation5 + $0x2a0] sm:$0xff]  ;;  %v1033_v54 = vpack.c.bf16 %v189_v45, %v188_v44 }
  0x52   :  { %990 = vmatprep.subr.bf16.mxu1 %v989_v18  ;;  %v156_v50 = vld [vmem:[#allocation5 + $0x210] sm:$0xff]  ;;  %v175_v53 = vld [vmem:[#allocation5 + $0x2a8] sm:$0xff]  ;;  %v190_v55 = vld [vmem:[#allocation5 + $0x320] sm:$0xff] }
  0x53   :  { %960 = vmatpush3.bf16.msra.mxu0 %v959_v24  ;;  %v191_v56 = vld [vmem:[#allocation5 + $0x328] sm:$0xff]  ;;  %v70_v57 = vld [vmem:[#allocation2 + $0x40] sm:$0xff]  ;;  %v1003_v58 = vpack.c.bf16 %v157_v51, %v156_v50  ;;  %v69_v59 = vld [vmem:[#allocation2 + $0x38] sm:$0xff]  ;;  %v1005_v61 = vpack.c.bf16 %v175_v53, %v174_v52 }
  0x54   :  { %962 = vmatprep.subr.bf16.mxu0 %v961_v26  ;;  %v72_v60 = vld [vmem:[#allocation2 + $0x50] sm:$0xff]  ;;  %v158_v62 = vld [vmem:[#allocation5 + $0x220] sm:$0xff]  ;;  %v159_v63 = vld [vmem:[#allocation5 + $0x228] sm:$0xff]  ;;  %v1037_v3 = vpack.c.bf16 %v191_v56, %v190_v55 }
  0x55   :  { %992 = vmatpush3.bf16.msra.mxu1 %v991_v25  ;;  %v71_v0 = vld [vmem:[#allocation2 + $0x48] sm:$0xff]  ;;  %v176_v1 = vld [vmem:[#allocation5 + $0x2b0] sm:$0xff]  ;;  %v177_v2 = vld [vmem:[#allocation5 + $0x2b8] sm:$0xff]  ;;  %v1007_v7 = vpack.c.bf16 %v159_v63, %v158_v62 }
  0x56   :  { %994 = vmatprep.subr.bf16.mxu1 %v993_v30  ;;  %v192_v4 = vld [vmem:[#allocation5 + $0x330] sm:$0xff]  ;;  %v193_v5 = vld [vmem:[#allocation5 + $0x338] sm:$0xff]  ;;  %v79_v9 = vld [vmem:[#allocation2 + $0x88] sm:$0xff]  ;;  %v1009_v10 = vpack.c.bf16 %v177_v2, %v176_v1 }
  0x57   :  { %964 = vmatpush3.bf16.msra.mxu0 %v963_v36  ;;  %v77_v6 = vld [vmem:[#allocation2 + $0x78] sm:$0xff]  ;;  %v76_v8 = vld [vmem:[#allocation2 + $0x70] sm:$0xff]  ;;  %v78_v13 = vld [vmem:[#allocation2 + $0x80] sm:$0xff]  ;;  %v1041_v16 = vpack.c.bf16 %v193_v5, %v192_v4 }
  0x58   :  { %998 = vmatprep.subr.bf16.mxu0 %v997_v38  ;;  %v160_v11 = vld [vmem:[#allocation5 + $0x230] sm:$0xff]  ;;  %v161_v12 = vld [vmem:[#allocation5 + $0x238] sm:$0xff]  ;;  %v178_v14 = vld [vmem:[#allocation5 + $0x2c0] sm:$0xff] }
  0x59   :  { %996 = vmatpush3.bf16.msra.mxu1 %v995_v37  ;;  %v179_v15 = vld [vmem:[#allocation5 + $0x2c8] sm:$0xff]  ;;  %v194_v17 = vld [vmem:[#allocation5 + $0x340] sm:$0xff]  ;;  %v84_v19 = vld [vmem:[#allocation2 + $0xb0] sm:$0xff]  ;;  %v1011_v20 = vpack.c.bf16 %v161_v12, %v160_v11 }
  0x5a   :  { %1030 = vmatprep.subr.bf16.mxu1 %v1029_v43  ;;  %274 = vmatmul.mubr.f32.vlgmr.msra.gmra.mrb[0].mxu0 %v62_v46  ;;  %v195_v18 = vld [vmem:[#allocation5 + $0x348] sm:$0xff]  ;;  %v86_v22 = vld [vmem:[#allocation2 + $0xc0] sm:$0xff]  ;;  %v1013_v23 = vpack.c.bf16 %v179_v15, %v178_v14  ;;  %v85_v26 = vld [vmem:[#allocation2 + $0xb8] sm:$0xff] }
  0x5b   :  { %1000 = vmatpush3.bf16.msra.mxu0 %v999_v47  ;;  %278 = vmatprep.mubr.f32.mxu0 %v70_v57  ;;  %v83_v21 = vld [vmem:[#allocation2 + $0xa8] sm:$0xff]  ;;  %v162_v24 = vld [vmem:[#allocation5 + $0x240] sm:$0xff]  ;;  %v180_v27 = vld [vmem:[#allocation5 + $0x2d0] sm:$0xff]  ;;  %v1045_v29 = vpack.c.bf16 %v195_v18, %v194_v17 }
  0x5c   :  { %359 = vmatmul.mubr.f32.vlgmr.msra.gmra.mrb[0].mxu1 %v64_v48  ;;  %1002 = vmatprep.subr.bf16.mxu0 %v1001_v49  ;;  %v163_v25 = vld [vmem:[#allocation5 + $0x248] sm:$0xff]  ;;  %v181_v28 = vld [vmem:[#allocation5 + $0x2d8] sm:$0xff]  ;;  %v196_v30 = vld [vmem:[#allocation5 + $0x350] sm:$0xff] }
  0x5d   :  { %1032 = vmatpush3.bf16.msra.mxu1 %v1029_v43  ;;  %363 = vmatprep.mubr.f32.mxu1 %v72_v60  ;;  %v197_v31 = vld [vmem:[#allocation5 + $0x358] sm:$0xff]  ;;  %v67_v32 = vld [vmem:[#allocation2 + $0x28] sm:$0xff]  ;;  %v1015_v33 = vpack.c.bf16 %v163_v25, %v162_v24  ;;  %v68_v34 = vld [vmem:[#allocation2 + $0x30] sm:$0xff]  ;;  %v1017_v35 = vpack.c.bf16 %v181_v28, %v180_v27 }
  0x5e   :  { %1034 = vmatprep.subr.bf16.mxu1 %v1033_v54  ;;  %279 = vmatmul.mubr.f32.gmra.mrb[2].mxu0 %v69_v59  ;;  %v164_v36 = vld [vmem:[#allocation5 + $0x250] sm:$0xff]  ;;  %v165_v37 = vld [vmem:[#allocation5 + $0x258] sm:$0xff]  ;;  %v182_v38 = vld [vmem:[#allocation5 + $0x2e0] sm:$0xff]  ;;  %v1049_v40 = vpack.c.bf16 %v197_v31, %v196_v30 }
  0x5f   :  { %1004 = vmatpush3.bf16.msra.mxu0 %v1003_v58  ;;  %283 = vmatprep.mubr.f32.mxu0 %v77_v6  ;;  %v183_v39 = vld [vmem:[#allocation5 + $0x2e8] sm:$0xff]  ;;  %v198_v41 = vld [vmem:[#allocation5 + $0x360] sm:$0xff]  ;;  %v1019_v43 = vpack.c.bf16 %v165_v37, %v164_v36  ;;  %v184_v47 = vld [vmem:[#allocation5 + $0x2f0] sm:$0xff] }
  0x60   :  { %364 = vmatmul.mubr.f32.gmra.mrb[2].mxu1 %v71_v0  ;;  %1006 = vmatprep.subr.bf16.mxu0 %v1005_v61  ;;  %v199_v42 = vld [vmem:[#allocation5 + $0x368] sm:$0xff]  ;;  %v1021_v44 = vpack.c.bf16 %v183_v39, %v182_v38  ;;  %v166_v45 = vld [vmem:[#allocation5 + $0x260] sm:$0xff]  ;;  %v185_v48 = vld [vmem:[#allocation5 + $0x2f8] sm:$0xff] }
  0x61   :  { %1036 = vmatpush3.bf16.msra.mxu1 %v1033_v54  ;;  %368 = vmatprep.mubr.f32.mxu1 %v79_v9  ;;  %v167_v46 = vld [vmem:[#allocation5 + $0x268] sm:$0xff]  ;;  %v1053_v49 = vpack.c.bf16 %v199_v42, %v198_v41  ;;  %v200_v50 = vld [vmem:[#allocation5 + $0x370] sm:$0xff]  ;;  %v201_v51 = vld [vmem:[#allocation5 + $0x378] sm:$0xff]  ;;  %v1025_v53 = vpack.c.bf16 %v185_v48, %v184_v47 }
  0x62   :  { %1038 = vmatprep.subr.bf16.mxu1 %v1037_v3  ;;  %284 = vmatmul.mubr.f32.gmra.mrb[4].mxu0 %v76_v8  ;;  %v1023_v52 = vpack.c.bf16 %v167_v46, %v166_v45  ;;  %v168_v54 = vld [vmem:[#allocation5 + $0x270] sm:$0xff]  ;;  %v169_v55 = vld [vmem:[#allocation5 + $0x278] sm:$0xff]  ;;  %v1057_v56 = vpack.c.bf16 %v201_v51, %v200_v50  ;;  %v66_v58 = vld [vmem:[#allocation2 + $0x20] sm:$0xff] }
  0x63   :  { %1008 = vmatpush3.bf16.msra.mxu0 %v1007_v7  ;;  %288 = vmatprep.mubr.f32.mxu0 %v84_v19  ;;  %v1027_v57 = vpack.c.bf16 %v169_v55, %v168_v54  ;;  %v74_v59 = vld [vmem:[#allocation2 + $0x60] sm:$0xff]  ;;  %v75_v60 = vld [vmem:[#allocation2 + $0x68] sm:$0xff]  ;;  %v73_v62 = vld [vmem:[#allocation2 + $0x58] sm:$0xff] }
  0x64   :  { %369 = vmatmul.mubr.f32.gmra.mrb[4].mxu1 %v78_v13  ;;  %1010 = vmatprep.subr.bf16.mxu0 %v1009_v10  ;;  %v82_v61 = vld [vmem:[#allocation2 + $0xa0] sm:$0xff]  ;;  %v81_v63 = vld [vmem:[#allocation2 + $0x98] sm:$0xff]  ;;  %v80_v1 = vld [vmem:[#allocation2 + $0x90] sm:$0xff] }
  0x65   :  { %1040 = vmatpush3.bf16.msra.mxu1 %v1037_v3  ;;  %373 = vmatprep.mubr.f32.mxu1 %v86_v22  ;;  %v89_v0 = vld [vmem:[#allocation2 + $0xd8] sm:$0xff]  ;;  %v88_v2 = vld [vmem:[#allocation2 + $0xd0] sm:$0xff]  ;;  %v87_v3 = vld [vmem:[#allocation2 + $0xc8] sm:$0xff] }
  0x66   :  { %1042 = vmatprep.subr.bf16.mxu1 %v1041_v16  ;;  %289 = vmatmul.mubr.f32.gmra.mrb[6].mxu0 %v83_v21  ;;  %v553_v4 = vld [vmem:[#allocation7] sm:$0xff]  ;;  %v554_v5 = vld [vmem:[#allocation7 + $0x8] sm:$0xff]  ;;  %v555_v6 = vld [vmem:[#allocation7 + $0x10] sm:$0xff] }
  0x67   :  { %1012 = vmatpush3.bf16.msra.mxu0 %v1011_v20  ;;  %443 = vmatprep.mubr.f32.mxu0 %v67_v32  ;;  %v1061_v7 = vpack.c.bf16 %v554_v5, %v553_v4  ;;  %v556_v8 = vld [vmem:[#allocation7 + $0x18] sm:$0xff]  ;;  %v557_v10 = vld [vmem:[#allocation7 + $0x20] sm:$0xff]  ;;  %v558_v11 = vld [vmem:[#allocation7 + $0x28] sm:$0xff] }
  0x68   :  { %374 = vmatmul.mubr.f32.gmra.mrb[6].mxu1 %v85_v26  ;;  %1014 = vmatprep.subr.bf16.mxu0 %v1013_v23  ;;  %v1065_v9 = vpack.c.bf16 %v556_v8, %v555_v6  ;;  %v1069_v12 = vpack.c.bf16 %v558_v11, %v557_v10  ;;  %v559_v13 = vld [vmem:[#allocation7 + $0x30] sm:$0xff]  ;;  %v560_v14 = vld [vmem:[#allocation7 + $0x38] sm:$0xff]  ;;  %v562_v17 = vld [vmem:[#allocation7 + $0x48] sm:$0xff] }
  0x69   :  { %1044 = vmatpush3.bf16.msra.mxu1 %v1041_v16  ;;  %889 = vmatprep.mubr.f32.mxu1 %v68_v34  ;;  %v1073_v15 = vpack.c.bf16 %v560_v14, %v559_v13  ;;  %v561_v16 = vld [vmem:[#allocation7 + $0x40] sm:$0xff]  ;;  %v563_v19 = vld [vmem:[#allocation7 + $0x50] sm:$0xff]  ;;  %v564_v20 = vld [vmem:[#allocation7 + $0x58] sm:$0xff] }
  0x6a   :  { %1046 = vmatprep.subr.bf16.mxu1 %v1045_v29  ;;  %v1077_v18 = vpack.c.bf16 %v562_v17, %v561_v16  ;;  %v1081_v21 = vpack.c.bf16 %v564_v20, %v563_v19  ;;  %v565_v22 = vld [vmem:[#allocation7 + $0x60] sm:$0xff]  ;;  %v566_v23 = vld [vmem:[#allocation7 + $0x68] sm:$0xff]  ;;  %v567_v25 = vld [vmem:[#allocation7 + $0x70] sm:$0xff] }
  0x6b   :  { %1016 = vmatpush3.bf16.msra.mxu0 %v1015_v33  ;;  %v1085_v24 = vpack.c.bf16 %v566_v23, %v565_v22  ;;  %v568_v26 = vld [vmem:[#allocation7 + $0x78] sm:$0xff] }
  0x6c   :  { %1018 = vmatprep.subr.bf16.mxu0 %v1017_v35  ;;  %v1089_v27 = vpack.c.bf16 %v568_v26, %v567_v25  ;;  %v684_v25 = vld [vmem:[%s1316_s4] ss:$0 sm:$0xff] }
  0x6d   :  { %1048 = vmatpush3.bf16.msra.mxu1 %v1045_v29  ;;  %v683_v29 = vld [vmem:[%s1314_s2] ss:$0 sm:$0xff] }
  0x6e   :  { %1050 = vmatprep.subr.bf16.mxu1 %v1049_v40 }
  0x6f   :  { %1020 = vmatpush3.bf16.msra.mxu0 %v1019_v43 }
  0x70   :  { %1022 = vmatprep.subr.bf16.mxu0 %v1021_v44 }
  0x71   :  { %1052 = vmatpush3.bf16.msra.mxu1 %v1049_v40 }
  0x72   :  { %1054 = vmatprep.subr.bf16.mxu1 %v1053_v49 }
  0x73   :  { %1024 = vmatpush3.bf16.msra.mxu0 %v1023_v52 }
  0x74   :  { %1026 = vmatprep.subr.bf16.mxu0 %v1025_v53 }
  0x75   :  { %1056 = vmatpush3.bf16.msra.mxu1 %v1053_v49 }
  0x76   :  { %1058 = vmatprep.subr.bf16.mxu1 %v1057_v56 }
  0x77   :  { %1028 = vmatpush3.bf16.msra.mxu0 %v1027_v57 }
  0x78   :  { %1062 = vmatprep.subr.bf16.mxu0 %v1061_v7 }
  0x79   :  { %1060 = vmatpush3.bf16.msra.mxu1 %v1057_v56 }
  0x7a   :  { %444 = vmatmul.mubr.f32.vlgmr.msra.gmra.mrb[8].mxu0 %v66_v58  ;;  %1093 = vmatprep.subr.bf16.mxu1 %v1061_v7 }
  0x7b   :  { %448 = vmatprep.mubr.f32.mxu0 %v74_v59  ;;  %1064 = vmatpush3.bf16.msra.mxu0 %v1061_v7 }
  0x7c   :  { %890 = vmatmul.mubr.f32.vlgmr.msra.gmra.mrb[8].mxu1 %v75_v60  ;;  %1066 = vmatprep.subr.bf16.mxu0 %v1065_v9 }
  0x7d   :  { %892 = vmatprep.mubr.f32.mxu1 %v82_v61  ;;  %1101 = vmatpush3.bf16.msra.mxu1 %v1061_v7 }
  0x7e   :  { %449 = vmatmul.mubr.f32.gmra.mrb[10].mxu0 %v73_v62  ;;  %1094 = vmatprep.subr.bf16.mxu1 %v1065_v9 }
  0x7f   :  { %453 = vmatprep.mubr.f32.mxu0 %v81_v63  ;;  %1068 = vmatpush3.bf16.msra.mxu0 %v1065_v9 }
  0x80   :  { %893 = vmatmul.mubr.f32.gmra.mrb[10].mxu1 %v89_v0  ;;  %1070 = vmatprep.subr.bf16.mxu0 %v1069_v12 }
  0x81   :  { %1102 = vmatpush3.bf16.msra.mxu1 %v1065_v9 }
  0x82   :  { %454 = vmatmul.mubr.f32.gmra.mrb[12].mxu0 %v80_v1  ;;  %1095 = vmatprep.subr.bf16.mxu1 %v1069_v12 }
  0x83   :  { %458 = vmatprep.mubr.f32.mxu0 %v88_v2  ;;  %1072 = vmatpush3.bf16.msra.mxu0 %v1069_v12 }
  0x84   :  { %1074 = vmatprep.subr.bf16.mxu0 %v1073_v15 }
  0x85   :  { %1103 = vmatpush3.bf16.msra.mxu1 %v1069_v12 }
  0x86   :  { %459 = vmatmul.mubr.f32.gmra.mrb[14].mxu0 %v87_v3  ;;  %1096 = vmatprep.subr.bf16.mxu1 %v1073_v15 }
  0x87   :  { %1076 = vmatpush3.bf16.msra.mxu0 %v1073_v15 }
  0x88   :  { %1078 = vmatprep.subr.bf16.mxu0 %v1077_v18 }
  0x89   :  { %1104 = vmatpush3.bf16.msra.mxu1 %v1073_v15 }
  0x8a   :  { %1097 = vmatprep.subr.bf16.mxu1 %v1077_v18 }
  0x8b   :  { %1080 = vmatpush3.bf16.msra.mxu0 %v1077_v18 }
  0x8c   :  { %1082 = vmatprep.subr.bf16.mxu0 %v1081_v21 }
  0x8d   :  { %1105 = vmatpush3.bf16.msra.mxu1 %v1077_v18 }
  0x8e   :  { %1098 = vmatprep.subr.bf16.mxu1 %v1081_v21 }
  0x8f   :  { %1084 = vmatpush3.bf16.msra.mxu0 %v1081_v21 }
  0x90   :  { %1086 = vmatprep.subr.bf16.mxu0 %v1085_v24 }
  0x91   :  { %1106 = vmatpush3.bf16.msra.mxu1 %v1081_v21 }
  0x92   :  { %1099 = vmatprep.subr.bf16.mxu1 %v1085_v24 }
  0x93   :  { %1088 = vmatpush3.bf16.msra.mxu0 %v1085_v24 }
  0x94   :  { %1090 = vmatprep.subr.bf16.mxu0 %v1089_v27 }
  0x95   :  { %1107 = vmatpush3.bf16.msra.mxu1 %v1085_v24 }
  0x96   :  { %1100 = vmatprep.subr.bf16.mxu1 %v1089_v27 }
  0x97   :  { %1092 = vmatpush3.bf16.msra.mxu0 %v1089_v27 }
  0x99   :  { %1108 = vmatpush3.bf16.msra.mxu1 %v1089_v27 }
 0x12d   :  { %v717_v28 = vpop.f32.mrb[0].mxu0 }
 0x12e   :  { %v718_v30 = vpop.f32.mrb[1].mxu0 }
 0x12f   :  { %v761_v31 = vpop.f32.mrb[0].mxu1  ;;  %v719_v32 = vadd.f32 %v718_v30, %v717_v28 }
 0x130   :  { %v762_v33 = vpop.f32.mrb[1].mxu1 }
 0x131   :  { %v763_v34 = vadd.f32 %v762_v33, %v761_v31  ;;  %v276_v35 = vadd.f32 %v719_v32, %v683_v29  ;;  %v720_v36 = vpop.f32.mrb[2].mxu0 }
 0x132   :  { %v721_v37 = vpop.f32.mrb[3].mxu0 }
 0x133   :  { %v764_v38 = vpop.f32.mrb[2].mxu1  ;;  %v361_v39 = vadd.f32 %v763_v34, %v276_v35  ;;  %v722_v40 = vadd.f32 %v721_v37, %v720_v36 }
 0x134   :  { %v765_v41 = vpop.f32.mrb[3].mxu1 }
 0x135   :  { %v766_v42 = vadd.f32 %v765_v41, %v764_v38  ;;  %v281_v43 = vadd.f32 %v722_v40, %v683_v29  ;;  %v723_v44 = vpop.f32.mrb[4].mxu0 }
 0x136   :  { %v724_v45 = vpop.f32.mrb[5].mxu0 }
 0x137   :  { %v767_v46 = vpop.f32.mrb[4].mxu1  ;;  %v366_v47 = vadd.f32 %v766_v42, %v281_v43  ;;  %v725_v48 = vadd.f32 %v724_v45, %v723_v44 }
 0x138   :  { %v768_v49 = vpop.f32.mrb[5].mxu1 }
 0x139   :  { %v769_v50 = vadd.f32 %v768_v49, %v767_v46  ;;  %v286_v51 = vadd.f32 %v725_v48, %v683_v29  ;;  %v726_v52 = vpop.f32.mrb[6].mxu0 }
 0x13a   :  { %v727_v53 = vpop.f32.mrb[7].mxu0 }
 0x13b   :  { %v770_v54 = vpop.f32.mrb[6].mxu1  ;;  %v371_v55 = vadd.f32 %v769_v50, %v286_v51  ;;  %v728_v56 = vadd.f32 %v727_v53, %v726_v52 }
 0x13c   :  { %v771_v57 = vpop.f32.mrb[7].mxu1 }
 0x13d   :  { %v772_v58 = vadd.f32 %v771_v57, %v770_v54  ;;  %v291_v59 = vadd.f32 %v728_v56, %v683_v29 }
 0x13f   :  { %v376_v60 = vadd.f32 %v772_v58, %v291_v59 }
 0x14d   :  { %v805_v61 = vpop.f32.mrb[8].mxu0 }
 0x14e   :  { %v806_v62 = vpop.f32.mrb[9].mxu0 }
 0x14f   :  { %v891_v63 = vpop.f32.mrb[8].mxu1  ;;  %v807_v0 = vadd.f32 %v806_v62, %v805_v61 }
 0x150   :  { %v530_v1 = vpop.f32.mrb[9].mxu1 }
 0x151   :  { %v808_v2 = vpop.f32.mrb[10].mxu0  ;;  %v446_v3 = vadd.f32 %v807_v0, %v361_v39 }
 0x152   :  { %v809_v4 = vpop.f32.mrb[11].mxu0 }
 0x153   :  { %v894_v5 = vpop.f32.mrb[10].mxu1  ;;  %v810_v6 = vadd.f32 %v809_v4, %v808_v2  ;;  %v531_v7 = vadd.f32 %v530_v1, %v446_v3 }
 0x154   :  { %v540_v8 = vpop.f32.mrb[11].mxu1 }
 0x155   :  { %v451_v9 = vadd.f32 %v810_v6, %v366_v47  ;;  %v549_v10 = vmax.f32 %v531_v7, 0.0  ;;  %v811_v11 = vpop.f32.mrb[12].mxu0 }
 0x156   :  { %v812_v12 = vpop.f32.mrb[13].mxu0 }
 0x157   :  { %v536_v13 = vadd.f32 %v891_v63, %v451_v9  ;;  %v813_v14 = vadd.f32 %v812_v12, %v811_v11  ;;  %927 = vmatprep.mubr.f32.mxu0 %v549_v10 }
 0x159   :  { %v550_v15 = vmax.f32 %v536_v13, 0.0  ;;  %v814_v16 = vpop.f32.mrb[14].mxu0  ;;  %v456_v17 = vadd.f32 %v813_v14, %v371_v55 }
 0x15a   :  { %v815_v18 = vpop.f32.mrb[15].mxu0 }
 0x15b   :  { %v816_v19 = vadd.f32 %v815_v18, %v814_v16  ;;  %v541_v20 = vadd.f32 %v540_v8, %v456_v17  ;;  %928 = vmatmul.mubr.f32.vlgmr.msra.gmra.mrb[16].mxu0 %v550_v15 }
 0x15d   :  { %v461_v21 = vadd.f32 %v816_v19, %v376_v60  ;;  %v551_v22 = vmax.f32 %v541_v20, 0.0 }
 0x15f   :  { %v546_v23 = vadd.f32 %v894_v5, %v461_v21  ;;  %930 = vmatprep.mubr.f32.mxu1 %v551_v22 }
 0x161   :  { %v552_v24 = vmax.f32 %v546_v23, 0.0 }
 0x163   :  { %931 = vmatmul.mubr.f32.vlgmr.msra.gmra.mrb[12].mxu1 %v552_v24 }
 0x22e   :  { %v929_v26 = vpop.f32.mrb[16].mxu0 }
 0x22f   :  { %v648_v27 = vadd.f32 %v929_v26, %v684_v25  ;;  %v642_v28 = vpop.f32.mrb[17].mxu0 }
 0x230   :  { %v643_v29 = vadd.f32 %v684_v25, %v642_v28 }
 0x231   :  { %662 = vst [vmem:[#allocation8 + $0x8] sm:$0xff] %v648_v27 }
 0x232   :  { %661 = vst [vmem:[#allocation8] sm:$0xff] %v643_v29 }
 0x236   :  { %v932_v30 = vpop.f32.mrb[12].mxu1 }
 0x237   :  { %v658_v31 = vadd.f32 %v932_v30, %v684_v25  ;;  %v652_v32 = vpop.f32.mrb[13].mxu1 }
 0x238   :  { %v653_v33 = vadd.f32 %v684_v25, %v652_v32 }
 0x239   :  { %664 = vst [vmem:[#allocation8 + $0x18] sm:$0xff] %v658_v31 }
 0x23a   :  { %663 = vst [vmem:[#allocation8 + $0x10] sm:$0xff] %v653_v33 }
 0x23b   :  { %1194 = shalt.err (!%p1191_p0)
}
 0x23c   :  { %s1195_s14 = scalar_lea.hbm %s1317_s5, 512 }
 0x23d   :  { %p1196_p1 = scmp.ne.s32.totalorder %s1317_s5, %s1195_s14  ;;  %p1199_p2 = scmp.lt.u32.totalorder %s1195_s14, %s1317_s5 }
 0x23f   :  { %p1201_p3 = pnand %p1199_p2, %p1196_p1 }
 0x241   :  { %1204 = shalt.err (!%p1201_p3)
}
 0x242   :  { %676 = dma.vmem_to_hbm [thread:$0]  %s671_s11, 512, %s1317_s5, [#allocation4], %s1212_s28, %s1212_s28, %s1213_s29  }
 0x243   :  { %1209 = dma.done.wait [#allocation4], 512  }
 0x244   :  { %1210 = vsyncadd [#allocation4], 4294966784 }
 0x245   :  { %680 = vsyncpa [#allocation3], 1 }
 0x246   :  { %681 = vsyncpa [#allocation6], 1 }
 0x247   :  { %682 = vsyncpa [#allocation4], 1 }

</bundles_post_ra>
